<compile_context>
chip_gen: v5e
topology: v5e:2x2
jax: 0.10.0
libtpu: 0.0.40
codegen_flags: <defaults>
</compile_context>

<pallas_src>
import functools

import jax
import jax.numpy as jnp
from jax.experimental import pallas as pl
from jax.experimental.pallas import tpu as pltpu


def _ce_lsr_kernel(pre_ref, label_ref, loss_ref, *, para_lsr):
    # pre_ref:   (TB, C) logits (any float dtype; cast to f32 in-kernel)
    # label_ref: (TB, 1) int32 class indices
    # loss_ref:  (TB, 1) f32 per-row loss
    x = pre_ref[...].astype(jnp.float32)                         # (TB, C)
    tb, c = x.shape

    # Numerically stable log-sum-exp pieces.
    m = jnp.max(x, axis=-1, keepdims=True)                       # (TB, 1)
    z = x - m                                                    # (TB, C)
    lse = jnp.log(jnp.sum(jnp.exp(z), axis=-1, keepdims=True))   # (TB, 1)

    # z[label] via a masked row reduction (no one-hot materialized).
    labels = label_ref[...]                                      # (TB, 1) int32
    col = jax.lax.broadcasted_iota(jnp.int32, (tb, c), 1)        # (TB, C)
    z_lab = jnp.sum(jnp.where(col == labels, z, 0.0),
                    axis=-1, keepdims=True)                      # (TB, 1)
    sum_z = jnp.sum(z, axis=-1, keepdims=True)                   # (TB, 1)

    # loss = -sum(one_hot * (z - lse)) with one_hot = para/C + (1-para)@label
    #      = lse - (para/C)*sum(z) - (1-para)*z[label]
    smooth = jnp.float32(para_lsr) / jnp.float32(c)
    loss = lse - smooth * sum_z - jnp.float32(1.0 - para_lsr) * z_lab
    loss_ref[...] = loss


def _round_up(x, m):
    return ((x + m - 1) // m) * m


def _row_multiple(dtype):
    # Sublane packing: 8 rows for 32-bit, 16 for 16-bit, 32 for 8-bit dtypes.
    itemsize = jnp.dtype(dtype).itemsize
    return max(8, 32 // itemsize)


def cross_entropy_loss_lsr(pre, label, para_lsr=0.2, size_average=True,
                           block_rows=None):
    """JAX/Pallas equivalent of CrossEntropyLoss_LSR.forward(pre, label)."""
    b, c = pre.shape
    mult = _row_multiple(pre.dtype)

    # Pick a batch tile: biggest that keeps a double-buffered (TB, C) logits
    # tile comfortably inside the default scoped VMEM on v5e/v6e/v7x
    # (~8 MiB per buffer -> ~16 MiB double-buffered), capped at 1024 rows.
    if block_rows is None:
        bytes_per_row = c * jnp.dtype(pre.dtype).itemsize
        tb = min(1024, max(mult, (8 * 1024 * 1024) // max(bytes_per_row, 1)))
    else:
        tb = block_rows
    tb = _round_up(tb, mult)
    tb = min(tb, _round_up(b, mult))

    b_pad = _round_up(b, tb)
    grid = b_pad // tb

    # Keep logits in their original (possibly narrow) dtype for the HBM read;
    # the kernel casts to f32 internally.
    label_i32 = label.astype(jnp.int32)
    if b_pad != b:
        pre = jnp.pad(pre, ((0, b_pad - b), (0, 0)))
        label_i32 = jnp.pad(label_i32, (0, b_pad - b))
    label2d = label_i32.reshape(b_pad, 1)

    kernel = functools.partial(_ce_lsr_kernel, para_lsr=float(para_lsr))

    per_row = pl.pallas_call(
        kernel,
        out_shape=jax.ShapeDtypeStruct((b_pad, 1), jnp.float32),
        grid=(grid,),
        in_specs=[
            pl.BlockSpec((tb, c), lambda i: (i, 0)),   # logits tile
            pl.BlockSpec((tb, 1), lambda i: (i, 0)),   # labels tile
        ],
        out_specs=pl.BlockSpec((tb, 1), lambda i: (i, 0)),
        compiler_params=pltpu.CompilerParams(
            dimension_semantics=("parallel",)),
    )(pre, label2d)

    # Tiny tail reduction in plain XLA (drop padded rows first).
    loss_sum = jnp.sum(per_row[:b, 0])
    if size_average:
        return loss_sum / jnp.float32(b)
    return loss_sum


def _reference(pre, label, para_lsr=0.2, size_average=True):
    """Pure-JAX reference mirroring the PyTorch module."""
    b, c = pre.shape
    prob = para_lsr / c
    one_hot = jnp.full((b, c), prob, dtype=jnp.float32)
    one_hot = one_hot.at[jnp.arange(b), label].add(1.0 - para_lsr)
    logp = jax.nn.log_softmax(pre.astype(jnp.float32), axis=-1)
    loss = jnp.sum(-one_hot * logp, axis=1)
    return jnp.mean(loss) if size_average else jnp.sum(loss)


if __name__ == "__main__":
    key = jax.random.PRNGKey(0)
    k_pre, k_lab, k_pre2, k_lab2 = jax.random.split(key, 4)

    # Small shapes consistent with the module's forward (B, C) + (B,) labels.
    batch, classes = 8, 16
    pre = jax.random.normal(k_pre, (batch, classes), dtype=jnp.float32)
    label = jax.random.randint(k_lab, (batch,), 0, classes, dtype=jnp.int32)

    loss = cross_entropy_loss_lsr(pre, label, para_lsr=0.2, size_average=True)
    loss = jax.block_until_ready(loss)
    ref = _reference(pre, label, para_lsr=0.2, size_average=True)
    assert jnp.allclose(loss, ref, atol=1e-5, rtol=1e-5), (loss, ref)

    loss_sum = cross_entropy_loss_lsr(pre, label, para_lsr=0.2,
                                      size_average=False)
    loss_sum = jax.block_until_ready(loss_sum)
    ref_sum = _reference(pre, label, para_lsr=0.2, size_average=False)
    assert jnp.allclose(loss_sum, ref_sum, atol=1e-5, rtol=1e-5), (loss_sum,
                                                                   ref_sum)

    # Exercise the gridded / padded / narrow-dtype path (bf16 logits,
    # batch not a multiple of the tile -> grid of 4 with padding).
    b2, c2 = 200, 384
    pre2 = jax.random.normal(k_pre2, (b2, c2), dtype=jnp.bfloat16)
    label2 = jax.random.randint(k_lab2, (b2,), 0, c2, dtype=jnp.int32)
    loss2 = cross_entropy_loss_lsr(pre2, label2, para_lsr=0.2,
                                   size_average=True, block_rows=64)
    loss2 = jax.block_until_ready(loss2)
    ref2 = _reference(pre2, label2, para_lsr=0.2, size_average=True)
    assert jnp.allclose(loss2, ref2, atol=1e-4, rtol=1e-4), (loss2, ref2)

    print("KERNEL_OK")
</pallas_src>

<mosaic_0001>
module attributes {stable_mosaic.version = 11 : i64} {
  func.func @_ce_lsr_kernel(%arg0: i32, %arg1: memref<8x16xf32, #tpu.memory_space<vmem>>, %arg2: memref<8x1xi32, #tpu.memory_space<vmem>>, %arg3: memref<8x1xf32, #tpu.memory_space<vmem>>) attributes {dimension_semantics = [#tpu.dimension_semantics<parallel>], iteration_bounds = array<i64: 1>, scalar_prefetch = 0 : i64, scratch_operands = 0 : i64, tpu.core_type = #tpu.core_type<tc>, window_params = [{transform_indices = @transform_0, window_bounds = array<i64: 8, 16>}, {transform_indices = @transform_1, window_bounds = array<i64: 8, 1>}, {transform_indices = @transform_2, window_bounds = array<i64: 8, 1>}]} {
    %c0 = arith.constant 0 : index
    %c0_0 = arith.constant 0 : index
    %0 = vector.load %arg1[%c0, %c0_0] : memref<8x16xf32, #tpu.memory_space<vmem>>, vector<8x16xf32>
    %cst = arith.constant dense<0xFF800000> : vector<8xf32>
    %1 = vector.multi_reduction <maximumf>, %0, %cst [1] : vector<8x16xf32> to vector<8xf32>
    %2 = vector.shape_cast %1 : vector<8xf32> to vector<8x1xf32>
    %3 = vector.broadcast %2 : vector<8x1xf32> to vector<8x16xf32>
    %4 = arith.subf %0, %3 : vector<8x16xf32>
    %5 = math.exp %4 : vector<8x16xf32>
    %cst_1 = arith.constant dense<0.000000e+00> : vector<8xf32>
    %6 = vector.multi_reduction <add>, %5, %cst_1 [1] : vector<8x16xf32> to vector<8xf32>
    %7 = vector.shape_cast %6 : vector<8xf32> to vector<8x1xf32>
    %8 = math.log %7 : vector<8x1xf32>
    %c0_2 = arith.constant 0 : index
    %c0_3 = arith.constant 0 : index
    %9 = vector.load %arg2[%c0_2, %c0_3] : memref<8x1xi32, #tpu.memory_space<vmem>>, vector<8x1xi32>
    %10 = tpu.iota {dimensions = array<i32: 1>} : vector<8x16xi32>
    %11 = vector.broadcast %9 : vector<8x1xi32> to vector<8x16xi32>
    %12 = arith.cmpi eq, %10, %11 : vector<8x16xi32>
    %cst_4 = arith.constant 0.000000e+00 : f32
    %13 = vector.broadcast %cst_4 : f32 to vector<8x16xf32>
    %14 = arith.select %12, %4, %13 : vector<8x16xi1>, vector<8x16xf32>
    %cst_5 = arith.constant dense<0.000000e+00> : vector<8xf32>
    %15 = vector.multi_reduction <add>, %14, %cst_5 [1] : vector<8x16xf32> to vector<8xf32>
    %16 = vector.shape_cast %15 : vector<8xf32> to vector<8x1xf32>
    %cst_6 = arith.constant dense<0.000000e+00> : vector<8xf32>
    %17 = vector.multi_reduction <add>, %4, %cst_6 [1] : vector<8x16xf32> to vector<8xf32>
    %18 = vector.shape_cast %17 : vector<8xf32> to vector<8x1xf32>
    %cst_7 = arith.constant 2.000000e-01 : f32
    %cst_8 = arith.constant 1.600000e+01 : f32
    %19 = arith.divf %cst_7, %cst_8 : f32
    %20 = vector.broadcast %19 : f32 to vector<8x1xf32>
    %21 = arith.mulf %20, %18 : vector<8x1xf32>
    %22 = arith.subf %8, %21 : vector<8x1xf32>
    %cst_9 = arith.constant 8.000000e-01 : f32
    %23 = vector.broadcast %cst_9 : f32 to vector<8x1xf32>
    %24 = arith.mulf %23, %16 : vector<8x1xf32>
    %25 = arith.subf %22, %24 : vector<8x1xf32>
    %c0_10 = arith.constant 0 : index
    %c0_11 = arith.constant 0 : index
    %26 = vector.load %arg3[%c0_10, %c0_11] : memref<8x1xf32, #tpu.memory_space<vmem>>, vector<8x1xf32>
    tpu.vector_store %arg3[%c0_10, %c0_11], %25 {strides = array<i32>} : memref<8x1xf32, #tpu.memory_space<vmem>>, vector<8x1xf32>,
    return
  }
  func.func @transform_0(%arg0: i32) -> (i32, i32) {
    %c0_i32 = arith.constant 0 : i32
    %c0_i32_0 = arith.constant 0 : i32
    return %arg0, %c0_i32 : i32, i32
  }
  func.func @transform_1(%arg0: i32) -> (i32, i32) {
    %c0_i32 = arith.constant 0 : i32
    %c0_i32_0 = arith.constant 0 : i32
    return %arg0, %c0_i32 : i32, i32
  }
  func.func @transform_2(%arg0: i32) -> (i32, i32) {
    %c0_i32 = arith.constant 0 : i32
    %c0_i32_0 = arith.constant 0 : i32
    return %arg0, %c0_i32 : i32, i32
  }
}

</mosaic_0001>

<bundles_post_ra>
// kernel: tpu_custom_call.1
= control target key start
LH: loop header
LB: loop body
LE: loop exit
PB: predicated region body
PF: predicated region fallthrough
CT: control target
= control target key end

     0   :  { %vm12_vm0 = vcmask 130048   ;;  %v54_v1 = vmov 0   ;;  %v25_v9 = vlaneseq  ;;  %vm42_vm2 = vcmask 7168   ;;  %s83_s0 = inlined_call_operand.vmem [shape: f32[8,16], index: 0, kind: input, shape index: {}]   ;;  %s84_s1 = inlined_call_operand.vmem [shape: s32[8,1], index: 1, kind: input, shape index: {}]   ;;  %s85_s2 = inlined_call_operand.vmem [shape: f32[8,1], index: 2, kind: output, shape index: {}]  }
   0x1   :  { %v11_v0 = vld [vmem:[%s83_s0] sm:$0xff]  ;;  %49 = vset.pattern.permute.xlu0 %v54_v1 }
   0x2   :  { %v13_v2 = vsel %vm12_vm0, %v11_v0, -inf  ;;  %v24_v3 = vld [vmem:[%s84_s1] sm:$0xff]  ;;  %v26_v10 = vand.u32 127, %v25_v9 }
   0x3   :  { %14 = vmax.xlane.f32.xlu0 %v13_v2 }
  0x17   :  { %28 = vperm.xlu0 %49, %v24_v3  }
  0x76   :  { %v15_v4 = vpop.xlane.xlu0 %14 }
  0x77   :  { %v16_v5 = vsub.f32 %v11_v0, %v15_v4 }
  0x79   :  { %v17_v6 = vmul.f32 1.442695, %v16_v5  ;;  %v35_v12 = vsel %vm12_vm0, %v16_v5, 0.0 }
  0x7b   :  { %50 = vpow2.f32 %v17_v6 }
  0x81   :  { %v51_v7 = vpop.eup %50 }
  0x82   :  { %v19_v8 = vsel %vm12_vm0, %v51_v7, 0.0 }
  0x83   :  { %20 = vadd.xlane.f32.xlu1 %v19_v8 }
  0x89   :  { %v29_v11 = vpop.permute.xlu0 %28 }
  0x8a   :  { %vm30_vm1 = vcmp.eq.s32.totalorder %v26_v10, %v29_v11 }
  0x8b   :  { %36 = vadd.xlane.f32.xlu1 %v35_v12  ;;  %v31_v13 = vsel %vm30_vm1, %v16_v5, 0.0 }
  0x8c   :  { %v32_v14 = vsel %vm12_vm0, %v31_v13, 0.0 }
  0x8d   :  { %33 = vadd.xlane.f32.xlu2 %v32_v14 }
  0xf6   :  { %v21_v15 = vpop.xlane.xlu1 %20 }
  0xf7   :  { %52 = vlog2.f32 %v21_v15 }
  0xfd   :  { %v53_v16 = vpop.eup %52 }
  0xfe   :  { %v23_v17 = vmul.f32 0.6931472, %v53_v16  ;;  %v37_v18 = vpop.xlane.xlu1 %36 }
  0xff   :  { %v38_v19 = vmul.f32 0.0125, %v37_v18 }
 0x100   :  { %v34_v20 = vpop.xlane.xlu2 %33 }
 0x101   :  { %v39_v21 = vsub.f32 %v23_v17, %v38_v19  ;;  %v40_v22 = vmul.f32 0.8, %v34_v20 }
 0x103   :  { %v41_v23 = vsub.f32 %v39_v21, %v40_v22 }
 0x105   :  { %43 = vst.msk [vmem:[%s85_s2] sm:$0xff] %vm42_vm2, %v41_v23 }

</bundles_post_ra>
